<compile_context>
chip_gen: v6e
topology: v6e:2x2x1
jax: 0.10.0
libtpu: 0.0.40
codegen_flags: <defaults>
</compile_context>

<pallas_src>
import functools

import numpy as np

import jax
import jax.numpy as jnp
from jax import lax
from jax.experimental import pallas as pl
from jax.experimental.pallas import tpu as pltpu

KH = KW = 3      # kernel_size
PAD = 1          # (kernel_size - 1) * dilation // 2
BN_EPS = 1e-5    # torch.nn.BatchNorm2d default


def rcpaba_kernel(img_w, cin, x_ref, mask_ref, w_ref, b_ref, o_ref, patches_ref):
    """One block of `images_per_block` images, channels-first / lane-flattened.

    x_ref       : (Cin,  LW)         LW = images_per_block * H*W (lane axis)
    mask_ref    : (9,    LW)         per-tap zero-padding masks (precomputed)
    w_ref       : (Cout, 9*Cin)      fused effective 3x3 weight, (kh,kw,cin)-major
    b_ref       : (Cout, 1)          fused effective bias
    o_ref       : (Cout, LW)         output
    patches_ref : (9*Cin, LW) VMEM   im2col scratch
    """
    lw = x_ref.shape[1]
    x = x_ref[...]                                         # (Cin, LW)

    # im2col via XLU lane rotations; zero padding (and cross-image isolation)
    # via the precomputed per-tap masks.  Each tap goes straight to scratch.
    tap = 0
    for dy in (-1, 0, 1):            # kh - PAD
        for dx in (-1, 0, 1):        # kw - PAD
            shift = dy * img_w + dx
            if shift == 0:
                col = x
            else:
                rolled = pltpu.roll(x, shift=(-shift) % lw, axis=1)
                col = rolled * mask_ref[tap:tap + 1, :]    # (Cin, LW)
            patches_ref[tap * cin:(tap + 1) * cin, :] = col
            tap += 1

    # single fused conv as one MXU matmul, lane-dense (Cout, LW) result
    acc = jnp.dot(w_ref[...], patches_ref[...],
                  preferred_element_type=jnp.float32)      # (Cout, LW)
    acc = acc + b_ref[...]                                 # bias broadcast
    o_ref[...] = (acc * jax.nn.sigmoid(acc)).astype(o_ref.dtype)   # SiLU


def _pick_num_blocks(n):
    """1 block on single-TC chips (v5e/v6e); 2 on v7x (one per TensorCore)."""
    try:
        kind = jax.devices()[0].device_kind.lower()
        cores = 2 if "v7" in kind else 1
    except Exception:  # pragma: no cover - conservative fallback
        cores = 1
    nb = max(1, min(cores, n))
    while n % nb:
        nb -= 1
    return nb


def rcpaba_forward(x_nchw, weight_eq, bias_eq, *, num_blocks=None):
    """x_nchw: (N, Cin, H, W) f32; weight_eq: (Cout, Cin, 3, 3); bias_eq: (Cout,).

    Returns (N, Cout, H, W) f32 (same layout as the PyTorch module's output).
    """
    N, Cin, H, W = x_nchw.shape
    Cout = weight_eq.shape[0]
    HW = H * W

    if num_blocks is None:
        num_blocks = _pick_num_blocks(N)
    assert N % num_blocks == 0
    imgs_per_block = N // num_blocks
    LW = imgs_per_block * HW                     # block lane width

    # channels-first, images folded into the lane axis: (Cin, N*HW)
    x_flat = jnp.transpose(x_nchw, (1, 0, 2, 3)).reshape(Cin, N * HW)
    # (Cout, Cin, KH, KW) -> (Cout, KH, KW, Cin) -> (Cout, KH*KW*Cin)
    w_flat = jnp.transpose(weight_eq, (0, 2, 3, 1)).reshape(Cout, KH * KW * Cin)
    b_col = bias_eq.reshape(Cout, 1)

    # grid-invariant per-tap zero-padding masks, precomputed on the host.
    pos = np.arange(HW)
    yy, xx = pos // W, pos % W
    rows = []
    for dy in (-1, 0, 1):
        for dx in (-1, 0, 1):
            rows.append(((yy + dy >= 0) & (yy + dy < H) &
                         (xx + dx >= 0) & (xx + dx < W)).astype(np.float32))
    mask_block = jnp.asarray(np.tile(np.stack(rows), (1, imgs_per_block)))  # (9, LW)

    out_flat = pl.pallas_call(
        functools.partial(rcpaba_kernel, W, Cin),
        out_shape=jax.ShapeDtypeStruct((Cout, N * HW), jnp.float32),
        grid=(num_blocks,),
        in_specs=[
            pl.BlockSpec((Cin, LW), lambda b: (0, b)),                 # x slab
            pl.BlockSpec((9, LW), lambda b: (0, 0)),                   # masks (resident)
            pl.BlockSpec((Cout, KH * KW * Cin), lambda b: (0, 0)),     # weight (resident)
            pl.BlockSpec((Cout, 1), lambda b: (0, 0)),                 # bias   (resident)
        ],
        out_specs=pl.BlockSpec((Cout, LW), lambda b: (0, b)),
        scratch_shapes=[pltpu.VMEM((KH * KW * Cin, LW), jnp.float32)], # im2col
        compiler_params=pltpu.CompilerParams(
            dimension_semantics=("parallel",)),
    )(x_flat, mask_block, w_flat, b_col)

    return jnp.transpose(out_flat.reshape(Cout, N, H, W), (1, 0, 2, 3))


# ---------------- host-side branch/BN fusion (RCpaBA.conv_eq_wb) ----------------

def _fuse_bn(weight, gamma, beta, mean, var, eps=BN_EPS):
    """Fold an eval-mode BatchNorm into the preceding bias-free conv."""
    t = gamma / jnp.sqrt(var + eps)                   # (Cout,)
    return weight * t[:, None, None, None], beta - mean * t


def make_equivalent_conv(w3, w1, bn3, bn1, bn_sc, has_shortcut):
    """Fold (conv3x3+bn) + (conv1x1+bn_1) [+ (identity+bn_sc)] into one 3x3 conv."""
    w3_f, b3_f = _fuse_bn(w3, *bn3)
    w1_f, b1_f = _fuse_bn(w1, *bn1)
    weight_eq = w3_f.at[:, :, PAD, PAD].add(w1_f[:, :, 0, 0])
    bias_eq = b3_f + b1_f
    if has_shortcut:
        cin = w1.shape[1]
        w_id = jnp.eye(cin, dtype=w1.dtype)[:, :, None, None]   # (C, C, 1, 1)
        wsc_f, bsc_f = _fuse_bn(w_id, *bn_sc)
        weight_eq = weight_eq.at[:, :, PAD, PAD].add(wsc_f[:, :, 0, 0])
        bias_eq = bias_eq + bsc_f
    return weight_eq, bias_eq


# ---------------- pure-JAX reference (matches RCpaBA forward) ----------------

def rcpaba_reference(x, w3, w1, bn3, bn1, bn_sc, has_shortcut):
    """Three-branch forward with eval-mode BatchNorm, then SiLU."""
    def bn(y, p):
        gamma, beta, mean, var = p
        scale = (gamma / jnp.sqrt(var + BN_EPS))[None, :, None, None]
        return (y - mean[None, :, None, None]) * scale + beta[None, :, None, None]

    dn = ("NCHW", "OIHW", "NCHW")
    y3 = lax.conv_general_dilated(x, w3, (1, 1), ((PAD, PAD), (PAD, PAD)),
                                  dimension_numbers=dn)
    y1 = lax.conv_general_dilated(x, w1, (1, 1), "VALID", dimension_numbers=dn)
    out = bn(y3, bn3) + bn(y1, bn1)
    if has_shortcut:
        out = out + bn(x, bn_sc)
    return out * jax.nn.sigmoid(out)        # SiLU


if __name__ == "__main__":
    # RCpaBA(in_channels=8, out_channels=8, kernel_size=3, stride=1,
    #        dilation=1, groups=1, bn=True, act='silu')  -> has_shortcut=True
    N, C, H, W = 2, 8, 16, 16

    key = jax.random.PRNGKey(0)
    kx, k3, k1, kb3, kb1, kbsc = jax.random.split(key, 6)

    x = jax.random.normal(kx, (N, C, H, W), jnp.float32)
    w3 = jax.random.normal(k3, (C, C, KH, KW), jnp.float32) * 0.1   # conv   (no bias: bn=True)
    w1 = jax.random.normal(k1, (C, C, 1, 1), jnp.float32) * 0.1     # conv_1 (no bias)

    def bn_params(k):
        ka, kb, kc, kd = jax.random.split(k, 4)
        gamma = jax.random.uniform(ka, (C,), jnp.float32, 0.5, 1.5)
        beta = jax.random.normal(kb, (C,), jnp.float32) * 0.1
        mean = jax.random.normal(kc, (C,), jnp.float32) * 0.1
        var = jax.random.uniform(kd, (C,), jnp.float32, 0.5, 1.5)
        return gamma, beta, mean, var

    bn3, bn1, bn_sc = bn_params(kb3), bn_params(kb1), bn_params(kbsc)
    has_shortcut = True   # in_channels == out_channels and stride == 1

    weight_eq, bias_eq = make_equivalent_conv(w3, w1, bn3, bn1, bn_sc, has_shortcut)

    out = jax.block_until_ready(rcpaba_forward(x, weight_eq, bias_eq))
    ref = jax.block_until_ready(
        rcpaba_reference(x, w3, w1, bn3, bn1, bn_sc, has_shortcut))

    assert out.shape == (N, C, H, W)
    max_err = float(jnp.max(jnp.abs(out - ref)))
    assert jnp.allclose(out, ref, rtol=1e-3, atol=1e-3), max_err

    print("KERNEL_OK")
</pallas_src>

<mosaic_0001>
module attributes {stable_mosaic.version = 11 : i64} {
  func.func @rcpaba_kernel(%arg0: i32, %arg1: memref<8x512xf32, #tpu.memory_space<vmem>>, %arg2: memref<9x512xf32, #tpu.memory_space<vmem>>, %arg3: memref<8x72xf32, #tpu.memory_space<vmem>>, %arg4: memref<8x1xf32, #tpu.memory_space<vmem>>, %arg5: memref<8x512xf32, #tpu.memory_space<vmem>>, %arg6: memref<72x512xf32, #tpu.memory_space<vmem>>) attributes {dimension_semantics = [#tpu.dimension_semantics<parallel>], iteration_bounds = array<i64: 1>, scalar_prefetch = 0 : i64, scratch_operands = 1 : i64, tpu.core_type = #tpu.core_type<tc>, window_params = [{transform_indices = @transform_0, window_bounds = array<i64: 8, 512>}, {pipeline_mode = #tpu.pipeline_mode<synchronous>, transform_indices = @transform_1, window_bounds = array<i64: 9, 512>}, {pipeline_mode = #tpu.pipeline_mode<synchronous>, transform_indices = @transform_2, window_bounds = array<i64: 8, 72>}, {pipeline_mode = #tpu.pipeline_mode<synchronous>, transform_indices = @transform_3, window_bounds = array<i64: 8, 1>}, {transform_indices = @transform_4, window_bounds = array<i64: 8, 512>}]} {
    %c0 = arith.constant 0 : index
    %c0_0 = arith.constant 0 : index
    %0 = vector.load %arg1[%c0, %c0_0] : memref<8x512xf32, #tpu.memory_space<vmem>>, vector<8x512xf32>
    %c17_i32 = arith.constant 17 : i32
    %1 = tpu.dynamic_rotate %0 by %c17_i32 dim 1 : vector<8x512xf32>, i32 -> vector<8x512xf32>
    %c0_1 = arith.constant 0 : index
    %c0_2 = arith.constant 0 : index
    %2 = vector.load %arg2[%c0_1, %c0_2] : memref<9x512xf32, #tpu.memory_space<vmem>>, vector<1x512xf32>
    %3 = vector.broadcast %2 : vector<1x512xf32> to vector<8x512xf32>
    %4 = arith.mulf %1, %3 : vector<8x512xf32>
    %c0_3 = arith.constant 0 : index
    %c0_4 = arith.constant 0 : index
    %5 = vector.load %arg6[%c0_3, %c0_4] : memref<72x512xf32, #tpu.memory_space<vmem>>, vector<8x512xf32>
    tpu.vector_store %arg6[%c0_3, %c0_4], %4 {strides = array<i32>} : memref<72x512xf32, #tpu.memory_space<vmem>>, vector<8x512xf32>,
    %c16_i32 = arith.constant 16 : i32
    %6 = tpu.dynamic_rotate %0 by %c16_i32 dim 1 : vector<8x512xf32>, i32 -> vector<8x512xf32>
    %c1 = arith.constant 1 : index
    %c0_5 = arith.constant 0 : index
    %7 = vector.load %arg2[%c1, %c0_5] : memref<9x512xf32, #tpu.memory_space<vmem>>, vector<1x512xf32>
    %8 = vector.broadcast %7 : vector<1x512xf32> to vector<8x512xf32>
    %9 = arith.mulf %6, %8 : vector<8x512xf32>
    %c8 = arith.constant 8 : index
    %c0_6 = arith.constant 0 : index
    %10 = vector.load %arg6[%c8, %c0_6] : memref<72x512xf32, #tpu.memory_space<vmem>>, vector<8x512xf32>
    tpu.vector_store %arg6[%c8, %c0_6], %9 {strides = array<i32>} : memref<72x512xf32, #tpu.memory_space<vmem>>, vector<8x512xf32>,
    %c15_i32 = arith.constant 15 : i32
    %11 = tpu.dynamic_rotate %0 by %c15_i32 dim 1 : vector<8x512xf32>, i32 -> vector<8x512xf32>
    %c2 = arith.constant 2 : index
    %c0_7 = arith.constant 0 : index
    %12 = vector.load %arg2[%c2, %c0_7] : memref<9x512xf32, #tpu.memory_space<vmem>>, vector<1x512xf32>
    %13 = vector.broadcast %12 : vector<1x512xf32> to vector<8x512xf32>
    %14 = arith.mulf %11, %13 : vector<8x512xf32>
    %c16 = arith.constant 16 : index
    %c0_8 = arith.constant 0 : index
    %15 = vector.load %arg6[%c16, %c0_8] : memref<72x512xf32, #tpu.memory_space<vmem>>, vector<8x512xf32>
    tpu.vector_store %arg6[%c16, %c0_8], %14 {strides = array<i32>} : memref<72x512xf32, #tpu.memory_space<vmem>>, vector<8x512xf32>,
    %c1_i32 = arith.constant 1 : i32
    %16 = tpu.dynamic_rotate %0 by %c1_i32 dim 1 : vector<8x512xf32>, i32 -> vector<8x512xf32>
    %c3 = arith.constant 3 : index
    %c0_9 = arith.constant 0 : index
    %17 = vector.load %arg2[%c3, %c0_9] : memref<9x512xf32, #tpu.memory_space<vmem>>, vector<1x512xf32>
    %18 = vector.broadcast %17 : vector<1x512xf32> to vector<8x512xf32>
    %19 = arith.mulf %16, %18 : vector<8x512xf32>
    %c24 = arith.constant 24 : index
    %c0_10 = arith.constant 0 : index
    %20 = vector.load %arg6[%c24, %c0_10] : memref<72x512xf32, #tpu.memory_space<vmem>>, vector<8x512xf32>
    tpu.vector_store %arg6[%c24, %c0_10], %19 {strides = array<i32>} : memref<72x512xf32, #tpu.memory_space<vmem>>, vector<8x512xf32>,
    %c32 = arith.constant 32 : index
    %c0_11 = arith.constant 0 : index
    %21 = vector.load %arg6[%c32, %c0_11] : memref<72x512xf32, #tpu.memory_space<vmem>>, vector<8x512xf32>
    tpu.vector_store %arg6[%c32, %c0_11], %0 {strides = array<i32>} : memref<72x512xf32, #tpu.memory_space<vmem>>, vector<8x512xf32>,
    %c511_i32 = arith.constant 511 : i32
    %22 = tpu.dynamic_rotate %0 by %c511_i32 dim 1 : vector<8x512xf32>, i32 -> vector<8x512xf32>
    %c5 = arith.constant 5 : index
    %c0_12 = arith.constant 0 : index
    %23 = vector.load %arg2[%c5, %c0_12] : memref<9x512xf32, #tpu.memory_space<vmem>>, vector<1x512xf32>
    %24 = vector.broadcast %23 : vector<1x512xf32> to vector<8x512xf32>
    %25 = arith.mulf %22, %24 : vector<8x512xf32>
    %c40 = arith.constant 40 : index
    %c0_13 = arith.constant 0 : index
    %26 = vector.load %arg6[%c40, %c0_13] : memref<72x512xf32, #tpu.memory_space<vmem>>, vector<8x512xf32>
    tpu.vector_store %arg6[%c40, %c0_13], %25 {strides = array<i32>} : memref<72x512xf32, #tpu.memory_space<vmem>>, vector<8x512xf32>,
    %c497_i32 = arith.constant 497 : i32
    %27 = tpu.dynamic_rotate %0 by %c497_i32 dim 1 : vector<8x512xf32>, i32 -> vector<8x512xf32>
    %c6 = arith.constant 6 : index
    %c0_14 = arith.constant 0 : index
    %28 = vector.load %arg2[%c6, %c0_14] : memref<9x512xf32, #tpu.memory_space<vmem>>, vector<1x512xf32>
    %29 = vector.broadcast %28 : vector<1x512xf32> to vector<8x512xf32>
    %30 = arith.mulf %27, %29 : vector<8x512xf32>
    %c48 = arith.constant 48 : index
    %c0_15 = arith.constant 0 : index
    %31 = vector.load %arg6[%c48, %c0_15] : memref<72x512xf32, #tpu.memory_space<vmem>>, vector<8x512xf32>
    tpu.vector_store %arg6[%c48, %c0_15], %30 {strides = array<i32>} : memref<72x512xf32, #tpu.memory_space<vmem>>, vector<8x512xf32>,
    %c496_i32 = arith.constant 496 : i32
    %32 = tpu.dynamic_rotate %0 by %c496_i32 dim 1 : vector<8x512xf32>, i32 -> vector<8x512xf32>
    %c7 = arith.constant 7 : index
    %c0_16 = arith.constant 0 : index
    %33 = vector.load %arg2[%c7, %c0_16] : memref<9x512xf32, #tpu.memory_space<vmem>>, vector<1x512xf32>
    %34 = vector.broadcast %33 : vector<1x512xf32> to vector<8x512xf32>
    %35 = arith.mulf %32, %34 : vector<8x512xf32>
    %c56 = arith.constant 56 : index
    %c0_17 = arith.constant 0 : index
    %36 = vector.load %arg6[%c56, %c0_17] : memref<72x512xf32, #tpu.memory_space<vmem>>, vector<8x512xf32>
    tpu.vector_store %arg6[%c56, %c0_17], %35 {strides = array<i32>} : memref<72x512xf32, #tpu.memory_space<vmem>>, vector<8x512xf32>,
    %c495_i32 = arith.constant 495 : i32
    %37 = tpu.dynamic_rotate %0 by %c495_i32 dim 1 : vector<8x512xf32>, i32 -> vector<8x512xf32>
    %c8_18 = arith.constant 8 : index
    %c0_19 = arith.constant 0 : index
    %38 = vector.load %arg2[%c8_18, %c0_19] : memref<9x512xf32, #tpu.memory_space<vmem>>, vector<1x512xf32>
    %39 = vector.broadcast %38 : vector<1x512xf32> to vector<8x512xf32>
    %40 = arith.mulf %37, %39 : vector<8x512xf32>
    %c64 = arith.constant 64 : index
    %c0_20 = arith.constant 0 : index
    %41 = vector.load %arg6[%c64, %c0_20] : memref<72x512xf32, #tpu.memory_space<vmem>>, vector<8x512xf32>
    tpu.vector_store %arg6[%c64, %c0_20], %40 {strides = array<i32>} : memref<72x512xf32, #tpu.memory_space<vmem>>, vector<8x512xf32>,
    %c0_21 = arith.constant 0 : index
    %c0_22 = arith.constant 0 : index
    %42 = vector.load %arg3[%c0_21, %c0_22] : memref<8x72xf32, #tpu.memory_space<vmem>>, vector<8x72xf32>
    %c0_23 = arith.constant 0 : index
    %c0_24 = arith.constant 0 : index
    %43 = vector.load %arg6[%c0_23, %c0_24] : memref<72x512xf32, #tpu.memory_space<vmem>>, vector<72x512xf32>
    %cst = arith.constant dense<0.000000e+00> : vector<8x512xf32>
    %44 = tpu.matmul %42, %43, %cst {dimension_numbers = #tpu.dot_dimension_numbers<[1], [0], [0], [1], [0, 0, 1, 1], [], []>} : vector<8x72xf32>, vector<72x512xf32>, vector<8x512xf32> -> vector<8x512xf32>
    %c0_25 = arith.constant 0 : index
    %c0_26 = arith.constant 0 : index
    %45 = vector.load %arg4[%c0_25, %c0_26] : memref<8x1xf32, #tpu.memory_space<vmem>>, vector<8x1xf32>
    %46 = vector.broadcast %45 : vector<8x1xf32> to vector<8x512xf32>
    %47 = arith.addf %44, %46 : vector<8x512xf32>
    %48 = arith.negf %47 : vector<8x512xf32>
    %49 = math.exp %48 : vector<8x512xf32>
    %cst_27 = arith.constant 1.000000e+00 : f32
    %50 = vector.broadcast %cst_27 : f32 to vector<8x512xf32>
    %51 = arith.addf %50, %49 : vector<8x512xf32>
    %52 = arith.divf %50, %51 : vector<8x512xf32>
    %53 = arith.mulf %47, %52 : vector<8x512xf32>
    %c0_28 = arith.constant 0 : index
    %c0_29 = arith.constant 0 : index
    %54 = vector.load %arg5[%c0_28, %c0_29] : memref<8x512xf32, #tpu.memory_space<vmem>>, vector<8x512xf32>
    tpu.vector_store %arg5[%c0_28, %c0_29], %53 {strides = array<i32>} : memref<8x512xf32, #tpu.memory_space<vmem>>, vector<8x512xf32>,
    return
  }
  func.func @transform_0(%arg0: i32) -> (i32, i32) {
    %c0_i32 = arith.constant 0 : i32
    %c0_i32_0 = arith.constant 0 : i32
    return %c0_i32, %arg0 : i32, i32
  }
  func.func @transform_1(%arg0: i32) -> (i32, i32) {
    %c0_i32 = arith.constant 0 : i32
    %c0_i32_0 = arith.constant 0 : i32
    %c0_i32_1 = arith.constant 0 : i32
    return %c0_i32, %c0_i32_0 : i32, i32
  }
  func.func @transform_2(%arg0: i32) -> (i32, i32) {
    %c0_i32 = arith.constant 0 : i32
    %c0_i32_0 = arith.constant 0 : i32
    %c0_i32_1 = arith.constant 0 : i32
    return %c0_i32, %c0_i32_0 : i32, i32
  }
  func.func @transform_3(%arg0: i32) -> (i32, i32) {
    %c0_i32 = arith.constant 0 : i32
    %c0_i32_0 = arith.constant 0 : i32
    %c0_i32_1 = arith.constant 0 : i32
    return %c0_i32, %c0_i32_0 : i32, i32
  }
  func.func @transform_4(%arg0: i32) -> (i32, i32) {
    %c0_i32 = arith.constant 0 : i32
    %c0_i32_0 = arith.constant 0 : i32
    return %c0_i32, %arg0 : i32, i32
  }
}

</mosaic_0001>

<bundles_post_ra>
// kernel: tpu_custom_call.1
= control target key start
LH: loop header
LB: loop body
LE: loop exit
PB: predicated region body
PF: predicated region fallthrough
CT: control target
= control target key end

     0   :  { %9 = vsyncpa [#allocation4], 0  ;;  %s927_s0 = inlined_call_operand.hbm [shape: f32[8,512], index: 0, kind: input, shape index: {}]   ;;  %s928_s1 = inlined_call_operand.hbm [shape: f32[9,512], index: 1, kind: input, shape index: {}]   ;;  %s929_s2 = inlined_call_operand.vmem [shape: f32[8,72], index: 2, kind: input, shape index: {}]   ;;  %s930_s3 = inlined_call_operand.vmem [shape: f32[8,1], index: 3, kind: input, shape index: {}]   ;;  %s931_s4 = inlined_call_operand.hbm [shape: f32[8,512], index: 4, kind: output, shape index: {}]  }
   0x1   :  { %10 = vsyncpa [#allocation7], 0 }
   0x2   :  { %11 = vsyncpa [#allocation5], 0  ;;  %s746_s15 = smov [#allocation3]   ;;  %s747_s17 = smov [#allocation6]  }
   0x3   :  { %s18_s16 = sshll.u32 %s746_s15, 4  ;;  %s27_s18 = sshll.u32 %s747_s17, 4  ;;  %s19_s16 = int_to_ptr.vmem [resolvable:$true] %s18_s16  ;;  %s28_s18 = int_to_ptr.vmem [resolvable:$true] %s27_s18 }
   0x4   :  { %s688_s19 = scalar_lea.vmem %s19_s16, 512  ;;  %p693_p1 = scmp.lt.s32.totalorder %s19_s16, %s19_s16 }
   0x5   :  { %p689_p0 = scmp.ne.s32.totalorder %s19_s16, %s688_s19  ;;  %p694_p2 = scmp.lt.s32.totalorder %s688_s19, %s688_s19 }
   0x7   :  { %p695_p3 = por %p694_p2, %p693_p1 }
   0x9   :  { %p696_p4 = pnand %p695_p3, %p689_p0 }
   0xb   :  { %699 = shalt.err (!%p696_p4)
}
   0xc   :  { %21 = dma.hbm_to_vmem [thread:$0]  %s927_s0, 512, %s19_s16, [#allocation4]  }
   0xd   :  { %s708_s22 = scalar_lea.vmem %s28_s18, 1024  ;;  %p713_p6 = scmp.lt.s32.totalorder %s28_s18, %s28_s18 }
   0xe   :  { %p709_p5 = scmp.ne.s32.totalorder %s28_s18, %s708_s22  ;;  %p714_p7 = scmp.lt.s32.totalorder %s708_s22, %s708_s22 }
  0x10   :  { %p715_p8 = por %p714_p7, %p713_p6 }
  0x12   :  { %p716_p9 = pnand %p715_p8, %p709_p5 }
  0x14   :  { %719 = shalt.err (!%p716_p9)
}
  0x15   :  { %s748_s23 = smov 512   ;;  %s749_s24 = smov 32  }
  0x16   :  { %33 = dma.hbm_to_vmem [thread:$0]  %s928_s1, 1024, %s28_s18, [#allocation7], %s748_s23, %s748_s23, %s749_s24  }
  0x17   :  { %740 = dma.done.wait [#allocation4], 512  }
  0x18   :  { %741 = vsyncadd [#allocation4], 4294966784 }
  0x19   :  { %742 = dma.done.wait [#allocation7], 1024  }
  0x1a   :  { %743 = vsyncadd [#allocation7], 4294966272  ;;  %v792_v0 = vld [vmem:[#allocation3 + $0x10] sm:$0xff]  ;;  %v794_v1 = vld [vmem:[#allocation3] sm:$0xff]  ;;  %s750_s0 = smov 111   ;;  %s751_s1 = smov 112   ;;  %v56_v7 = vlaneseq }
  0x1b   :  { %365 = vrot.lane.b32.xlu1 %v792_v0, %s750_s0  ;;  %361 = vrot.lane.b32.xlu0 %v794_v1, %s750_s0  ;;  %v798_v2 = vld [vmem:[#allocation3 + $0x18] sm:$0xff]  ;;  %v800_v3 = vld [vmem:[#allocation3 + $0x8] sm:$0xff]  ;;  %s752_s27 = smov 113   ;;  %s753_s28 = smov 127   ;;  %v757_v4 = vmov 0.0   ;;  %v758_v5 = vmov 0  }
  0x1c   :  { %s754_s29 = smov 1   ;;  %s755_s30 = smov 15   ;;  %516 = vmatprep.mubr.f32.mxu0 %v757_v4  ;;  %587 = vmatprep.mubr.f32.mxu1 %v757_v4  ;;  %v442_v6 = vld [vmem:[%s930_s3] sm:$0xff]  ;;  %v66_v8 = vshrl.u32 %v56_v7, 7  ;;  %v835_v9 = vand.u32 127, %v56_v7  ;;  %vm448_vm8 = vcmask 588800  }
  0x1d   :  { %s756_s5 = smov 16   ;;  %663 = vset.pattern.permute.xlu0 %v758_v5  ;;  %s759_s6 = smov 17   ;;  %v375_v14 = vld [vmem:[#allocation6 + $0x20] ss:$8 sm:$0xf] }
  0x1e   :  { %v837_v10 = vsub.s32 1, %v66_v8  ;;  %v839_v11 = vsub.s32 3, %v66_v8  ;;  %v841_v12 = vsub.s32 0, %v66_v8  ;;  %v843_v13 = vsub.s32 2, %v66_v8 }
  0x1f   :  { %367 = vrot.lane.b32.xlu1 %v798_v2, %s750_s0  ;;  %363 = vrot.lane.b32.xlu0 %v800_v3, %s750_s0  ;;  %vm369_vm0 = vcmp.lt.s32.totalorder %v835_v9, 111  ;;  %v331_v32 = vld [vmem:[#allocation6 + $0x7] ss:$8 sm:$0xf]  ;;  %vm325_vm1 = vcmp.lt.s32.totalorder %v835_v9, 112  ;;  %vm281_vm2 = vcmp.lt.s32.totalorder %v835_v9, 113 }
  0x20   :  { %v384_v17 = vrot.slane %v375_v14, %v837_v10  ;;  %v392_v18 = vrot.slane %v375_v14, %v839_v11  ;;  %v380_v19 = vrot.slane %v375_v14, %v841_v12  ;;  %v388_v20 = vrot.slane %v375_v14, %v843_v13  ;;  %v287_v49 = vld [vmem:[#allocation6 + $0x6] ss:$8 sm:$0xf] }
  0x21   :  { %v348_v34 = vrot.slane %v331_v32, %v839_v11  ;;  %v340_v35 = vrot.slane %v331_v32, %v837_v10  ;;  %v344_v36 = vrot.slane %v331_v32, %v843_v13  ;;  %v336_v37 = vrot.slane %v331_v32, %v841_v12 }
  0x22   :  { %v304_v51 = vrot.slane %v287_v49, %v839_v11  ;;  %v296_v52 = vrot.slane %v287_v49, %v837_v10  ;;  %v300_v53 = vrot.slane %v287_v49, %v843_v13  ;;  %v292_v54 = vrot.slane %v287_v49, %v841_v12  ;;  %v107_v49 = vld [vmem:[#allocation6 + $0x1] ss:$8 sm:$0xf] }
  0x23   :  { %319 = vrot.lane.b32.xlu1 %v800_v3, %s751_s1  ;;  %317 = vrot.lane.b32.xlu0 %v794_v1, %s751_s1  ;;  %vm237_vm3 = vcmp.lt.s32.totalorder %v835_v9, 127  ;;  %vm189_vm4 = vcmp.lt.s32.totalorder %v835_v9, 1  ;;  %vm145_vm5 = vcmp.lt.s32.totalorder %v835_v9, 15  ;;  %vm101_vm6 = vcmp.lt.s32.totalorder %v835_v9, 16 }
  0x24   :  { %vm58_vm7 = vcmp.lt.s32.totalorder %v835_v9, 17 }
  0x27   :  { %323 = vrot.lane.b32.xlu1 %v798_v2, %s751_s1  ;;  %321 = vrot.lane.b32.xlu0 %v792_v0, %s751_s1 }
  0x2b   :  { %275 = vrot.lane.b32.xlu1 %v800_v3, %s752_s27  ;;  %273 = vrot.lane.b32.xlu0 %v794_v1, %s752_s27 }
  0x2f   :  { %279 = vrot.lane.b32.xlu1 %v798_v2, %s752_s27  ;;  %277 = vrot.lane.b32.xlu0 %v792_v0, %s752_s27 }
  0x33   :  { %231 = vrot.lane.b32.xlu1 %v800_v3, %s753_s28  ;;  %229 = vrot.lane.b32.xlu0 %v794_v1, %s753_s28 }
  0x37   :  { %235 = vrot.lane.b32.xlu1 %v798_v2, %s753_s28  ;;  %233 = vrot.lane.b32.xlu0 %v792_v0, %s753_s28 }
  0x3b   :  { %183 = vrot.lane.b32.xlu1 %v800_v3, %s754_s29  ;;  %181 = vrot.lane.b32.xlu0 %v794_v1, %s754_s29 }
  0x3f   :  { %187 = vrot.lane.b32.xlu1 %v798_v2, %s754_s29  ;;  %185 = vrot.lane.b32.xlu0 %v792_v0, %s754_s29 }
  0x43   :  { %139 = vrot.lane.b32.xlu1 %v800_v3, %s755_s30  ;;  %137 = vrot.lane.b32.xlu0 %v794_v1, %s755_s30 }
  0x47   :  { %143 = vrot.lane.b32.xlu1 %v798_v2, %s755_s30  ;;  %141 = vrot.lane.b32.xlu0 %v792_v0, %s755_s30 }
  0x4b   :  { %95 = vrot.lane.b32.xlu1 %v800_v3, %s756_s5  ;;  %93 = vrot.lane.b32.xlu0 %v794_v1, %s756_s5 }
  0x4f   :  { %99 = vrot.lane.b32.xlu1 %v798_v2, %s756_s5  ;;  %97 = vrot.lane.b32.xlu0 %v792_v0, %s756_s5 }
  0x53   :  { %50 = vrot.lane.b32.xlu1 %v800_v3, %s759_s6  ;;  %48 = vrot.lane.b32.xlu0 %v794_v1, %s759_s6 }
  0x57   :  { %54 = vrot.lane.b32.xlu1 %v798_v2, %s759_s6  ;;  %52 = vrot.lane.b32.xlu0 %v792_v0, %s759_s6 }
  0x5b   :  { %445 = vperm.xlu0 %663, %v442_v6   ;;  %v243_v6 = vld [vmem:[#allocation6 + $0x5] ss:$8 sm:$0xf] }
  0x5c   :  { %v260_v8 = vrot.slane %v243_v6, %v839_v11  ;;  %v252_v14 = vrot.slane %v243_v6, %v837_v10 }
  0x8d   :  { %v366_v15 = vpop.permute.xlu1 %365  ;;  %v362_v16 = vpop.permute.xlu0 %361 }
  0x91   :  { %v368_v21 = vpop.permute.xlu1 %367  ;;  %v364_v22 = vpop.permute.xlu0 %363 }
  0x92   :  { %v370_v23 = vsel %vm369_vm0, %v366_v15, %v368_v21  ;;  %v372_v24 = vsel %vm369_vm0, %v362_v16, %v364_v22  ;;  %v371_v25 = vsel %vm369_vm0, %v364_v22, %v366_v15  ;;  %v373_v26 = vsel %vm369_vm0, %v368_v21, %v362_v16 }
  0x93   :  { %v398_v27 = vmul.f32 %v384_v17, %v371_v25  ;;  %v400_v28 = vmul.f32 %v392_v18, %v373_v26  ;;  %v397_v29 = vmul.f32 %v380_v19, %v372_v24  ;;  %v399_v30 = vmul.f32 %v388_v20, %v370_v23  ;;  %v195_v17 = vld [vmem:[#allocation6 + $0x3] ss:$8 sm:$0xf] }
  0x94   :  { %v256_v15 = vrot.slane %v243_v6, %v843_v13  ;;  %v248_v16 = vrot.slane %v243_v6, %v841_v12  ;;  %v200_v32 = vrot.slane %v195_v17, %v841_v12  ;;  %v63_v6 = vld [vmem:[#allocation6] ss:$8 sm:$0xf] }
  0x95   :  { %v320_v31 = vpop.permute.xlu1 %319  ;;  %466 = vmatprep.subr.mxu0 %v398_v27  ;;  %537 = vmatprep.subr.mxu1 %v400_v28  ;;  %v318_v33 = vpop.permute.xlu0 %317  ;;  %v204_v27 = vrot.slane %v195_v17, %v837_v10 }
  0x96   :  { %467 = vmatpush1.msra.mxu0 %v397_v29  ;;  %538 = vmatpush1.msra.mxu1 %v399_v30  ;;  %v328_v38 = vsel %vm325_vm1, %v318_v33, %v320_v31 }
  0x97   :  { %v353_v47 = vmul.f32 %v336_v37, %v328_v38 }
  0x99   :  { %v324_v39 = vpop.permute.xlu1 %323  ;;  %v322_v40 = vpop.permute.xlu0 %321 }
  0x9a   :  { %v329_v41 = vsel %vm325_vm1, %v324_v39, %v318_v33  ;;  %v326_v42 = vsel %vm325_vm1, %v322_v40, %v324_v39  ;;  %v327_v43 = vsel %vm325_vm1, %v320_v31, %v322_v40 }
  0x9b   :  { %v356_v44 = vmul.f32 %v348_v34, %v329_v41  ;;  %v354_v45 = vmul.f32 %v340_v35, %v327_v43  ;;  %v355_v46 = vmul.f32 %v344_v36, %v326_v42  ;;  %v208_v34 = vrot.slane %v195_v17, %v843_v13  ;;  %v151_v36 = vld [vmem:[#allocation6 + $0x2] ss:$8 sm:$0xf] }
  0x9c   :  { %v212_v35 = vrot.slane %v195_v17, %v839_v11 }
  0x9d   :  { %v276_v48 = vpop.permute.xlu1 %275  ;;  %468 = vmatprep.subr.mxu0 %v354_v45  ;;  %539 = vmatprep.subr.mxu1 %v356_v44  ;;  %v274_v50 = vpop.permute.xlu0 %273 }
  0x9e   :  { %469 = vmatpush1.msra.mxu0 %v353_v47  ;;  %540 = vmatpush1.msra.mxu1 %v355_v46  ;;  %v284_v55 = vsel %vm281_vm2, %v274_v50, %v276_v48  ;;  %v156_v46 = vrot.slane %v151_v36, %v841_v12  ;;  %v164_v47 = vrot.slane %v151_v36, %v843_v13 }
  0x9f   :  { %v309_v4 = vmul.f32 %v292_v54, %v284_v55 }
  0xa1   :  { %v280_v56 = vpop.permute.xlu1 %279  ;;  %v278_v57 = vpop.permute.xlu0 %277 }
  0xa2   :  { %v285_v58 = vsel %vm281_vm2, %v280_v56, %v274_v50  ;;  %v282_v59 = vsel %vm281_vm2, %v278_v57, %v280_v56  ;;  %v283_v60 = vsel %vm281_vm2, %v276_v48, %v278_v57  ;;  %v168_v48 = vrot.slane %v151_v36, %v839_v11 }
  0xa3   :  { %v312_v61 = vmul.f32 %v304_v51, %v285_v58  ;;  %v310_v62 = vmul.f32 %v296_v52, %v283_v60  ;;  %v311_v63 = vmul.f32 %v300_v53, %v282_v59  ;;  %v116_v58 = vrot.slane %v107_v49, %v837_v10 }
  0xa5   :  { %v232_v5 = vpop.permute.xlu1 %231  ;;  %470 = vmatprep.subr.mxu0 %v310_v62  ;;  %541 = vmatprep.subr.mxu1 %v312_v61  ;;  %v230_v7 = vpop.permute.xlu0 %229 }
  0xa6   :  { %471 = vmatpush1.msra.mxu0 %v309_v4  ;;  %542 = vmatpush1.msra.mxu1 %v311_v63  ;;  %v240_v18 = vsel %vm237_vm3, %v230_v7, %v232_v5  ;;  %v112_v63 = vrot.slane %v107_v49, %v841_v12  ;;  %v120_v4 = vrot.slane %v107_v49, %v843_v13 }
  0xa7   :  { %v265_v28 = vmul.f32 %v248_v16, %v240_v18 }
  0xa9   :  { %v236_v19 = vpop.permute.xlu1 %235  ;;  %v234_v20 = vpop.permute.xlu0 %233 }
  0xaa   :  { %v241_v21 = vsel %vm237_vm3, %v236_v19, %v230_v7  ;;  %v238_v22 = vsel %vm237_vm3, %v234_v20, %v236_v19  ;;  %v239_v23 = vsel %vm237_vm3, %v232_v5, %v234_v20  ;;  %v124_v5 = vrot.slane %v107_v49, %v839_v11 }
  0xab   :  { %v268_v24 = vmul.f32 %v260_v8, %v241_v21  ;;  %v266_v25 = vmul.f32 %v252_v14, %v239_v23  ;;  %v267_v26 = vmul.f32 %v256_v15, %v238_v22  ;;  %v72_v20 = vrot.slane %v63_v6, %v837_v10 }
  0xad   :  { %v184_v29 = vpop.permute.xlu1 %183  ;;  %472 = vmatprep.subr.mxu0 %v266_v25  ;;  %543 = vmatprep.subr.mxu1 %v268_v24  ;;  %v182_v30 = vpop.permute.xlu0 %181  ;;  %v68_v25 = vrot.slane %v63_v6, %v841_v12  ;;  %v405_v12 = vld [vmem:[%s929_s2] sm:$0xff]  ;;  %s760_s2 = smov [#allocation8]  }
  0xae   :  { %v192_v31 = vsel %vm189_vm4, %v182_v30, %v184_v29  ;;  %473 = vmatpush1.msra.mxu0 %v265_v28  ;;  %544 = vmatpush1.msra.mxu1 %v267_v26  ;;  %v76_v26 = vrot.slane %v63_v6, %v843_v13  ;;  %s632_s10 = sshll.u32 %s760_s2, 4  ;;  %s633_s10 = int_to_ptr.vmem [resolvable:$true] %s632_s10 }
  0xaf   :  { %v218_v33 = vmul.f32 %v204_v27, %v192_v31  ;;  %474 = vmatprep.subr.mxu0 %v800_v3  ;;  %545 = vmatprep.subr.mxu1 %v798_v2  ;;  %v80_v27 = vrot.slane %v63_v6, %v839_v11  ;;  %s720_s11 = scalar_lea.vmem %s633_s10, 512  ;;  %p725_p11 = scmp.lt.s32.totalorder %s633_s10, %s633_s10 }
  0xb0   :  { %475 = vmatpush1.msra.mxu0 %v794_v1  ;;  %546 = vmatpush1.msra.mxu1 %v792_v0  ;;  %v160_v0 = vrot.slane %v151_v36, %v837_v10  ;;  %p721_p10 = scmp.ne.s32.totalorder %s633_s10, %s720_s11  ;;  %p726_p12 = scmp.lt.s32.totalorder %s720_s11, %s720_s11 }
  0xb1   :  { %v188_v37 = vpop.permute.xlu1 %187  ;;  %476 = vmatprep.subr.mxu0 %v218_v33  ;;  %v186_v38 = vpop.permute.xlu0 %185 }
  0xb2   :  { %v193_v39 = vsel %vm189_vm4, %v188_v37, %v182_v30  ;;  %v190_v3 = vsel %vm189_vm4, %v186_v38, %v188_v37  ;;  %v191_v40 = vsel %vm189_vm4, %v184_v29, %v186_v38  ;;  %p727_p13 = por %p726_p12, %p725_p11 }
  0xb3   :  { %v217_v2 = vmul.f32 %v200_v32, %v193_v39  ;;  %v219_v41 = vmul.f32 %v208_v34, %v191_v40  ;;  %v220_v1 = vmul.f32 %v212_v35, %v190_v3 }
  0xb4   :  { %p728_p0 = pnand %p727_p13, %p721_p10 }
  0xb5   :  { %v140_v42 = vpop.permute.xlu1 %139  ;;  %477 = vmatpush1.msra.mxu0 %v217_v2  ;;  %547 = vmatprep.subr.mxu1 %v220_v1  ;;  %v138_v43 = vpop.permute.xlu0 %137 }
  0xb6   :  { %v148_v44 = vsel %vm145_vm5, %v138_v43, %v140_v42  ;;  %548 = vmatpush1.msra.mxu1 %v219_v41 }
  0xb7   :  { %v174_v45 = vmul.f32 %v160_v0, %v148_v44 }
  0xb9   :  { %v144_v50 = vpop.permute.xlu1 %143  ;;  %478 = vmatprep.subr.mxu0 %v174_v45  ;;  %v142_v51 = vpop.permute.xlu0 %141 }
  0xba   :  { %v149_v52 = vsel %vm145_vm5, %v144_v50, %v138_v43  ;;  %v146_v53 = vsel %vm145_vm5, %v142_v51, %v144_v50  ;;  %v147_v54 = vsel %vm145_vm5, %v140_v42, %v142_v51 }
  0xbb   :  { %v173_v55 = vmul.f32 %v156_v46, %v149_v52  ;;  %v175_v56 = vmul.f32 %v164_v47, %v147_v54  ;;  %v176_v57 = vmul.f32 %v168_v48, %v146_v53 }
  0xbd   :  { %v96_v59 = vpop.permute.xlu1 %95  ;;  %479 = vmatpush1.msra.mxu0 %v173_v55  ;;  %549 = vmatprep.subr.mxu1 %v176_v57  ;;  %v94_v60 = vpop.permute.xlu0 %93 }
  0xbe   :  { %v104_v61 = vsel %vm101_vm6, %v94_v60, %v96_v59  ;;  %550 = vmatpush1.msra.mxu1 %v175_v56 }
  0xbf   :  { %v130_v62 = vmul.f32 %v116_v58, %v104_v61 }
  0xc1   :  { %v100_v7 = vpop.permute.xlu1 %99  ;;  %480 = vmatprep.subr.mxu0 %v130_v62  ;;  %v98_v8 = vpop.permute.xlu0 %97 }
  0xc2   :  { %v105_v14 = vsel %vm101_vm6, %v100_v7, %v94_v60  ;;  %v102_v15 = vsel %vm101_vm6, %v98_v8, %v100_v7  ;;  %v103_v16 = vsel %vm101_vm6, %v96_v59, %v98_v8 }
  0xc3   :  { %v129_v17 = vmul.f32 %v112_v63, %v105_v14  ;;  %v131_v18 = vmul.f32 %v120_v4, %v103_v16  ;;  %v132_v19 = vmul.f32 %v124_v5, %v102_v15 }
  0xc5   :  { %v51_v21 = vpop.permute.xlu1 %50  ;;  %481 = vmatpush1.msra.mxu0 %v129_v17  ;;  %551 = vmatprep.subr.mxu1 %v132_v19  ;;  %v49_v22 = vpop.permute.xlu0 %48 }
  0xc6   :  { %v61_v23 = vsel %vm58_vm7, %v49_v22, %v51_v21  ;;  %552 = vmatpush1.msra.mxu1 %v131_v18 }
  0xc7   :  { %v86_v24 = vmul.f32 %v72_v20, %v61_v23 }
  0xc9   :  { %v55_v28 = vpop.permute.xlu1 %54  ;;  %482 = vmatprep.subr.mxu0 %v86_v24  ;;  %v53_v29 = vpop.permute.xlu0 %52 }
  0xca   :  { %v62_v10 = vsel %vm58_vm7, %v55_v28, %v49_v22  ;;  %v59_v30 = vsel %vm58_vm7, %v53_v29, %v55_v28  ;;  %v60_v31 = vsel %vm58_vm7, %v51_v21, %v53_v29 }
  0xcb   :  { %v85_v32 = vmul.f32 %v68_v25, %v62_v10  ;;  %v87_v33 = vmul.f32 %v76_v26, %v60_v31  ;;  %v88_v34 = vmul.f32 %v80_v27, %v59_v30 }
  0xcd   :  { %483 = vmatpush1.msra.mxu0 %v85_v32  ;;  %553 = vmatprep.subr.mxu1 %v88_v34 }
  0xce   :  { %642 = vmatmul.mubr.msk.f32.vlgmr.msra.gmra.mxu0 %vm448_vm8, %v405_v12  ;;  %554 = vmatpush1.msra.mxu1 %v87_v33 }
  0xcf   :  { %643 = vmatmul.mubr.msk.f32.vlgmr.msra.gmra.mxu1 %vm448_vm8, %v405_v12 }
  0xd6   :  { %v446_v11 = vpop.permute.xlu0 %445 }
 0x18e   :  { %v518_v13 = vpop.f32.mrf.mxu0 }
 0x18f   :  { %v519_v35 = vadd.f32 %v518_v13, %v446_v11  ;;  %v589_v36 = vpop.f32.mrf.mxu1 }
 0x190   :  { %v590_v37 = vadd.f32 %v589_v36, %v446_v11  ;;  %v520_v9 = vpop.f32.mrf.mxu0 }
 0x191   :  { %v644_v38 = vmul.f32 -1.442695, %v519_v35  ;;  %v521_v39 = vadd.f32 %v520_v9, %v446_v11  ;;  %v591_v3 = vpop.f32.mrf.mxu1 }
 0x192   :  { %v646_v40 = vmul.f32 -1.442695, %v590_v37  ;;  %v592_v2 = vadd.f32 %v591_v3, %v446_v11 }
 0x193   :  { %664 = vpow2.f32 %v644_v38  ;;  %v645_v41 = vmul.f32 -1.442695, %v521_v39 }
 0x194   :  { %666 = vpow2.f32 %v646_v40  ;;  %v647_v1 = vmul.f32 -1.442695, %v592_v2 }
 0x195   :  { %668 = vpow2.f32 %v645_v41 }
 0x196   :  { %670 = vpow2.f32 %v647_v1 }
 0x1a0   :  { %v665_v0 = vpop.eup %664 }
 0x1a1   :  { %v667_v42 = vpop.eup %666  ;;  %v606_v43 = vadd.f32 1.0, %v665_v0 }
 0x1a2   :  { %v669_v44 = vpop.eup %668  ;;  %v608_v45 = vadd.f32 1.0, %v667_v42 }
 0x1a3   :  { %v671_v46 = vpop.eup %670  ;;  %672 = vrcp.f32 %v606_v43  ;;  %v607_v47 = vadd.f32 1.0, %v669_v44 }
 0x1a4   :  { %674 = vrcp.f32 %v608_v45  ;;  %v609_v48 = vadd.f32 1.0, %v671_v46 }
 0x1a5   :  { %676 = vrcp.f32 %v607_v47 }
 0x1a6   :  { %678 = vrcp.f32 %v609_v48 }
 0x1b0   :  { %v673_v49 = vpop.eup %672 }
 0x1b1   :  { %v675_v50 = vpop.eup %674  ;;  %v618_v51 = vmul.f32 %v673_v49, %v519_v35 }
 0x1b2   :  { %v677_v52 = vpop.eup %676  ;;  %v620_v53 = vmul.f32 %v675_v50, %v590_v37 }
 0x1b3   :  { %v679_v54 = vpop.eup %678  ;;  %622 = vst [vmem:[#allocation8] sm:$0xff] %v618_v51  ;;  %v619_v55 = vmul.f32 %v677_v52, %v521_v39 }
 0x1b4   :  { %624 = vst [vmem:[#allocation8 + $0x10] sm:$0xff] %v620_v53  ;;  %v621_v56 = vmul.f32 %v679_v54, %v592_v2 }
 0x1b5   :  { %623 = vst [vmem:[#allocation8 + $0x8] sm:$0xff] %v619_v55 }
 0x1b6   :  { %625 = vst [vmem:[#allocation8 + $0x18] sm:$0xff] %v621_v56 }
 0x1b7   :  { %731 = shalt.err (!%p728_p0)
}
 0x1b8   :  { %635 = dma.vmem_to_hbm [thread:$0]  %s633_s10, 512, %s931_s4, [#allocation5]  }
 0x1b9   :  { %744 = dma.done.wait [#allocation5], 512  }
 0x1ba   :  { %745 = vsyncadd [#allocation5], 4294966784 }
 0x1bb   :  { %639 = vsyncpa [#allocation4], 1 }
 0x1bc   :  { %640 = vsyncpa [#allocation7], 1 }
 0x1bd   :  { %641 = vsyncpa [#allocation5], 1 }

</bundles_post_ra>
